<compile_context>
chip_gen: v7x
topology: tpu7x:2x2x1
jax: 0.10.0
libtpu: 0.0.40
codegen_flags: <defaults>
</compile_context>

<pallas_src>
import functools
import math

import jax
import jax.numpy as jnp
from jax.experimental import pallas as pl
from jax.experimental.pallas import tpu as pltpu


def _round_up(n, m):
    return ((n + m - 1) // m) * m


def _cdiv(a, b):
    return -(-a // b)


def qnet_kernel(x_ref, w1_ref, b1_ref, w2_ref, b2_ref, w3_ref, b3_ref, o_ref):
    # One (block_b, num_inputs) batch tile per grid step; all three matmuls and
    # both ReLUs fused in VMEM.  Matmul operands may be bf16 (MXU native on
    # v6e/v7x); accumulation / bias / ReLU are f32.
    x = x_ref[...]
    h1 = jnp.dot(x, w1_ref[...], preferred_element_type=jnp.float32) + b1_ref[...]
    h1 = jnp.maximum(h1, 0.0)
    h2 = jnp.dot(h1.astype(w2_ref.dtype), w2_ref[...],
                 preferred_element_type=jnp.float32) + b2_ref[...]
    h2 = jnp.maximum(h2, 0.0)
    q = jnp.dot(h2.astype(w3_ref.dtype), w3_ref[...],
                preferred_element_type=jnp.float32) + b3_ref[...]
    o_ref[...] = q.astype(o_ref.dtype)


@functools.partial(jax.jit, static_argnames=("block_b", "use_bf16"))
def _qnet_forward_padded(x, w1, b1, w2, b2, w3, b3, *, block_b, use_bf16):
    B, num_inputs = x.shape
    hidden = w1.shape[1]
    num_outputs = w3.shape[1]
    out_dtype = x.dtype

    # Cast matmul operands to bf16 (keeps f32 accumulation inside the kernel).
    if use_bf16:
        x_op = x.astype(jnp.bfloat16)
        w1_op = w1.astype(jnp.bfloat16)
        w2_op = w2.astype(jnp.bfloat16)
        w3_op = w3.astype(jnp.bfloat16)
    else:
        x_op, w1_op, w2_op, w3_op = x, w1, w2, w3
    b1_op = b1.astype(jnp.float32)
    b2_op = b2.astype(jnp.float32)
    b3_op = b3.astype(jnp.float32)

    grid = (B // block_b,)

    # Weights / biases are tiny: replicate the full tensors to every grid step
    # (constant index_map keeps them resident in VMEM, no re-DMA per step).
    def full(shape):
        return pl.BlockSpec(shape, lambda i: (0,) * len(shape))

    def nbytes(a):
        return a.size * a.dtype.itemsize

    cost = pl.CostEstimate(
        flops=2 * B * (num_inputs * hidden + hidden * hidden + hidden * num_outputs),
        transcendentals=0,
        bytes_accessed=(nbytes(x_op) + nbytes(w1_op) + nbytes(w2_op) + nbytes(w3_op)
                        + nbytes(b1_op) + nbytes(b2_op) + nbytes(b3_op)
                        + B * num_outputs * jnp.dtype(out_dtype).itemsize),
    )

    return pl.pallas_call(
        qnet_kernel,
        out_shape=jax.ShapeDtypeStruct((B, num_outputs), out_dtype),
        grid_spec=pltpu.PrefetchScalarGridSpec(
            num_scalar_prefetch=0,
            grid=grid,
            in_specs=[
                pl.BlockSpec((block_b, num_inputs), lambda i: (i, 0)),
                full((num_inputs, hidden)),
                full((1, hidden)),
                full((hidden, hidden)),
                full((1, hidden)),
                full((hidden, num_outputs)),
                full((1, num_outputs)),
            ],
            out_specs=pl.BlockSpec((block_b, num_outputs), lambda i: (i, 0)),
        ),
        compiler_params=pltpu.CompilerParams(
            dimension_semantics=("parallel",),
        ),
        cost_estimate=cost,
    )(x_op, w1_op, b1_op, w2_op, b2_op, w3_op, b3_op)


def qnet_forward(x, w1, b1, w2, b2, w3, b3, *, block_b=None, use_bf16=True):
    """QNet forward.  Handles arbitrary batch via padding; picks a large batch tile."""
    B = x.shape[0]
    if block_b is None:
        if B <= 512:
            # Small batch: one grid step holding the whole batch — nothing worth
            # pipelining, so avoid per-step overhead entirely.
            block_b = _round_up(max(B, 1), 8)
        else:
            # Large batch: big tiles (toward HBM roofline), and >= 2 grid steps so
            # the "parallel" axis can be sharded across v7x's two TensorCores.
            block_b = min(2048, _round_up(_cdiv(B, 2), 8))
    B_pad = _round_up(B, block_b)
    if B_pad != B:
        x = jnp.pad(x, ((0, B_pad - B), (0, 0)))
    q = _qnet_forward_padded(x, w1, b1, w2, b2, w3, b3,
                             block_b=block_b, use_bf16=use_bf16)
    return q[:B] if B_pad != B else q


def xavier_uniform(key, fan_in, fan_out, dtype=jnp.float32):
    # Matches torch.nn.init.xavier_uniform_(gain=1): U(-a, a), a = sqrt(6/(fan_in+fan_out)).
    # Stored as (fan_in, fan_out) so the kernel does x @ W.
    a = math.sqrt(6.0 / (fan_in + fan_out))
    return jax.random.uniform(key, (fan_in, fan_out), dtype, minval=-a, maxval=a)


def init_qnet_params(key, num_inputs, num_outputs, hidden_dim=64, dtype=jnp.float32):
    k1, k2, k3 = jax.random.split(key, 3)
    w1 = xavier_uniform(k1, num_inputs, hidden_dim, dtype)
    b1 = jnp.zeros((1, hidden_dim), dtype)
    w2 = xavier_uniform(k2, hidden_dim, hidden_dim, dtype)
    b2 = jnp.zeros((1, hidden_dim), dtype)
    w3 = xavier_uniform(k3, hidden_dim, num_outputs, dtype)
    b3 = jnp.zeros((1, num_outputs), dtype)
    return w1, b1, w2, b2, w3, b3


def qnet_reference(x, w1, b1, w2, b2, w3, b3, *, use_bf16=True):
    # Pure-JAX reference matching the kernel's bf16-operand / f32-accum math.
    cast = (lambda a: a.astype(jnp.bfloat16)) if use_bf16 else (lambda a: a)
    h1 = jnp.maximum(
        jnp.dot(cast(x), cast(w1), preferred_element_type=jnp.float32) + b1, 0.0)
    h2 = jnp.maximum(
        jnp.dot(cast(h1), cast(w2), preferred_element_type=jnp.float32) + b2, 0.0)
    q = jnp.dot(cast(h2), cast(w3), preferred_element_type=jnp.float32) + b3
    return q.astype(x.dtype)


def qnet_reference_f32(x, w1, b1, w2, b2, w3, b3):
    h1 = jnp.maximum(x @ w1 + b1, 0.0)
    h2 = jnp.maximum(h1 @ w2 + b2, 0.0)
    return h2 @ w3 + b3


if __name__ == "__main__":
    key = jax.random.PRNGKey(0)
    kx, kp = jax.random.split(key)

    batch, num_inputs, num_outputs, hidden_dim = 8, 16, 4, 64
    x = jax.random.normal(kx, (batch, num_inputs), jnp.float32)
    params = init_qnet_params(kp, num_inputs, num_outputs, hidden_dim)

    q = qnet_forward(x, *params)
    jax.block_until_ready(q)
    assert q.shape == (batch, num_outputs)

    # Tight check vs. a reference doing the same bf16-operand / f32-accum math.
    q_ref = qnet_reference(x, *params, use_bf16=True)
    assert jnp.allclose(q, q_ref, atol=1e-3, rtol=1e-3), "mismatch vs bf16 reference"

    # Looser sanity check vs. the full-f32 reference (bf16 quantization tolerance).
    q_f32 = qnet_reference_f32(x, *params)
    assert jnp.allclose(q, q_f32, atol=5e-2, rtol=5e-2), "mismatch vs f32 reference"

    # Also exercise the padded / multi-step path (odd batch, larger than one tile).
    kx2 = jax.random.PRNGKey(42)
    x_big = jax.random.normal(kx2, (1037, num_inputs), jnp.float32)
    q_big = qnet_forward(x_big, *params)
    jax.block_until_ready(q_big)
    assert q_big.shape == (1037, num_outputs)
    q_big_ref = qnet_reference(x_big, *params, use_bf16=True)
    assert jnp.allclose(q_big, q_big_ref, atol=1e-3, rtol=1e-3), "mismatch (padded path)"

    print("KERNEL_OK")
</pallas_src>

<mosaic_0001>
module attributes {stable_mosaic.version = 11 : i64} {
  func.func @qnet_kernel(%arg0: i32, %arg1: memref<8x16xbf16, #tpu.memory_space<vmem>>, %arg2: memref<16x64xbf16, #tpu.memory_space<vmem>>, %arg3: memref<1x64xf32, #tpu.memory_space<vmem>>, %arg4: memref<64x64xbf16, #tpu.memory_space<vmem>>, %arg5: memref<1x64xf32, #tpu.memory_space<vmem>>, %arg6: memref<64x4xbf16, #tpu.memory_space<vmem>>, %arg7: memref<1x4xf32, #tpu.memory_space<vmem>>, %arg8: memref<8x4xf32, #tpu.memory_space<vmem>>) attributes {dimension_semantics = [#tpu.dimension_semantics<parallel>], iteration_bounds = array<i64: 1>, scalar_prefetch = 0 : i64, scratch_operands = 0 : i64, tpu.core_type = #tpu.core_type<tc>, window_params = [{transform_indices = @transform_0, window_bounds = array<i64: 8, 16>}, {pipeline_mode = #tpu.pipeline_mode<synchronous>, transform_indices = @transform_1, window_bounds = array<i64: 16, 64>}, {pipeline_mode = #tpu.pipeline_mode<synchronous>, transform_indices = @transform_2, window_bounds = array<i64: 1, 64>}, {pipeline_mode = #tpu.pipeline_mode<synchronous>, transform_indices = @transform_3, window_bounds = array<i64: 64, 64>}, {pipeline_mode = #tpu.pipeline_mode<synchronous>, transform_indices = @transform_4, window_bounds = array<i64: 1, 64>}, {pipeline_mode = #tpu.pipeline_mode<synchronous>, transform_indices = @transform_5, window_bounds = array<i64: 64, 4>}, {pipeline_mode = #tpu.pipeline_mode<synchronous>, transform_indices = @transform_6, window_bounds = array<i64: 1, 4>}, {transform_indices = @transform_7, window_bounds = array<i64: 8, 4>}]} {
    %c0 = arith.constant 0 : index
    %c0_0 = arith.constant 0 : index
    %0 = vector.load %arg1[%c0, %c0_0] : memref<8x16xbf16, #tpu.memory_space<vmem>>, vector<8x16xbf16>
    %c0_1 = arith.constant 0 : index
    %c0_2 = arith.constant 0 : index
    %1 = vector.load %arg2[%c0_1, %c0_2] : memref<16x64xbf16, #tpu.memory_space<vmem>>, vector<16x64xbf16>
    %cst = arith.constant dense<0.000000e+00> : vector<8x64xf32>
    %2 = tpu.matmul %0, %1, %cst {dimension_numbers = #tpu.dot_dimension_numbers<[1], [0], [0], [1], [0, 0, 1, 1], [], []>} : vector<8x16xbf16>, vector<16x64xbf16>, vector<8x64xf32> -> vector<8x64xf32>
    %c0_3 = arith.constant 0 : index
    %c0_4 = arith.constant 0 : index
    %3 = vector.load %arg3[%c0_3, %c0_4] : memref<1x64xf32, #tpu.memory_space<vmem>>, vector<1x64xf32>
    %4 = vector.broadcast %3 : vector<1x64xf32> to vector<8x64xf32>
    %5 = arith.addf %2, %4 : vector<8x64xf32>
    %cst_5 = arith.constant 0.000000e+00 : f32
    %6 = vector.broadcast %cst_5 : f32 to vector<8x64xf32>
    %7 = arith.maximumf %5, %6 : vector<8x64xf32>
    %8 = arith.truncf %7 : vector<8x64xf32> to vector<8x64xbf16>
    %c0_6 = arith.constant 0 : index
    %c0_7 = arith.constant 0 : index
    %9 = vector.load %arg4[%c0_6, %c0_7] : memref<64x64xbf16, #tpu.memory_space<vmem>>, vector<64x64xbf16>
    %cst_8 = arith.constant dense<0.000000e+00> : vector<8x64xf32>
    %10 = tpu.matmul %8, %9, %cst_8 {dimension_numbers = #tpu.dot_dimension_numbers<[1], [0], [0], [1], [0, 0, 1, 1], [], []>} : vector<8x64xbf16>, vector<64x64xbf16>, vector<8x64xf32> -> vector<8x64xf32>
    %c0_9 = arith.constant 0 : index
    %c0_10 = arith.constant 0 : index
    %11 = vector.load %arg5[%c0_9, %c0_10] : memref<1x64xf32, #tpu.memory_space<vmem>>, vector<1x64xf32>
    %12 = vector.broadcast %11 : vector<1x64xf32> to vector<8x64xf32>
    %13 = arith.addf %10, %12 : vector<8x64xf32>
    %cst_11 = arith.constant 0.000000e+00 : f32
    %14 = vector.broadcast %cst_11 : f32 to vector<8x64xf32>
    %15 = arith.maximumf %13, %14 : vector<8x64xf32>
    %16 = arith.truncf %15 : vector<8x64xf32> to vector<8x64xbf16>
    %c0_12 = arith.constant 0 : index
    %c0_13 = arith.constant 0 : index
    %17 = vector.load %arg6[%c0_12, %c0_13] : memref<64x4xbf16, #tpu.memory_space<vmem>>, vector<64x4xbf16>
    %cst_14 = arith.constant dense<0.000000e+00> : vector<8x4xf32>
    %18 = tpu.matmul %16, %17, %cst_14 {dimension_numbers = #tpu.dot_dimension_numbers<[1], [0], [0], [1], [0, 0, 1, 1], [], []>} : vector<8x64xbf16>, vector<64x4xbf16>, vector<8x4xf32> -> vector<8x4xf32>
    %c0_15 = arith.constant 0 : index
    %c0_16 = arith.constant 0 : index
    %19 = vector.load %arg7[%c0_15, %c0_16] : memref<1x4xf32, #tpu.memory_space<vmem>>, vector<1x4xf32>
    %20 = vector.broadcast %19 : vector<1x4xf32> to vector<8x4xf32>
    %21 = arith.addf %18, %20 : vector<8x4xf32>
    %c0_17 = arith.constant 0 : index
    %c0_18 = arith.constant 0 : index
    %22 = vector.load %arg8[%c0_17, %c0_18] : memref<8x4xf32, #tpu.memory_space<vmem>>, vector<8x4xf32>
    tpu.vector_store %arg8[%c0_17, %c0_18], %21 {strides = array<i32>} : memref<8x4xf32, #tpu.memory_space<vmem>>, vector<8x4xf32>,
    return
  }
  func.func @transform_0(%arg0: i32) -> (i32, i32) {
    %c0_i32 = arith.constant 0 : i32
    %c0_i32_0 = arith.constant 0 : i32
    return %arg0, %c0_i32 : i32, i32
  }
  func.func @transform_1(%arg0: i32) -> (i32, i32) {
    %c0_i32 = arith.constant 0 : i32
    %c0_i32_0 = arith.constant 0 : i32
    %c0_i32_1 = arith.constant 0 : i32
    return %c0_i32, %c0_i32_0 : i32, i32
  }
  func.func @transform_2(%arg0: i32) -> (i32, i32) {
    %c0_i32 = arith.constant 0 : i32
    %c0_i32_0 = arith.constant 0 : i32
    %c0_i32_1 = arith.constant 0 : i32
    return %c0_i32, %c0_i32_0 : i32, i32
  }
  func.func @transform_3(%arg0: i32) -> (i32, i32) {
    %c0_i32 = arith.constant 0 : i32
    %c0_i32_0 = arith.constant 0 : i32
    %c0_i32_1 = arith.constant 0 : i32
    return %c0_i32, %c0_i32_0 : i32, i32
  }
  func.func @transform_4(%arg0: i32) -> (i32, i32) {
    %c0_i32 = arith.constant 0 : i32
    %c0_i32_0 = arith.constant 0 : i32
    %c0_i32_1 = arith.constant 0 : i32
    return %c0_i32, %c0_i32_0 : i32, i32
  }
  func.func @transform_5(%arg0: i32) -> (i32, i32) {
    %c0_i32 = arith.constant 0 : i32
    %c0_i32_0 = arith.constant 0 : i32
    %c0_i32_1 = arith.constant 0 : i32
    return %c0_i32, %c0_i32_0 : i32, i32
  }
  func.func @transform_6(%arg0: i32) -> (i32, i32) {
    %c0_i32 = arith.constant 0 : i32
    %c0_i32_0 = arith.constant 0 : i32
    %c0_i32_1 = arith.constant 0 : i32
    return %c0_i32, %c0_i32_0 : i32, i32
  }
  func.func @transform_7(%arg0: i32) -> (i32, i32) {
    %c0_i32 = arith.constant 0 : i32
    %c0_i32_0 = arith.constant 0 : i32
    return %arg0, %c0_i32 : i32, i32
  }
}

</mosaic_0001>

<bundles_post_ra>
// kernel: _qnet_forward_padded.1
= control target key start
LH: loop header
LB: loop body
LE: loop exit
PB: predicated region body
PF: predicated region fallthrough
CT: control target
= control target key end

     0   :  { %v330_v0 = vmov 0.0   ;;  %vm331_vm0 = vmmov 0   ;;  %vm43_vm1 = vcmask 130048   ;;  %vm128_vm2 = vcmask 523264   ;;  %s416_s1 = inlined_call_operand.vmem [shape: bf16[16,64], index: 1, kind: input, shape index: {}]   ;;  %s417_s0 = inlined_call_operand.vmem [shape: bf16[8,16], index: 0, kind: input, shape index: {}]   ;;  %s418_s3 = inlined_call_operand.vmem [shape: bf16[64,64], index: 3, kind: input, shape index: {}]   ;;  %s419_s5 = inlined_call_operand.vmem [shape: bf16[64,4], index: 5, kind: input, shape index: {}]   ;;  %s420_s2 = inlined_call_operand.vmem [shape: f32[1,64], index: 2, kind: input, shape index: {}]   ;;  %s421_s4 = inlined_call_operand.vmem [shape: f32[1,64], index: 4, kind: input, shape index: {}]   ;;  %s422_s6 = inlined_call_operand.vmem [shape: f32[1,4], index: 6, kind: input, shape index: {}]   ;;  %s423_s7 = inlined_call_operand.vmem [shape: f32[8,4], index: 7, kind: output, shape index: {}]  }
   0x1   :  { %289 = vmatprep.subr.bf16.mxu0 %v330_v0  ;;  %v321_v1 = vld [vmem:[%s416_s1] sm:$0xff]   ;;  %291 = vmatprep.mubr.msk.bf16.mxu0 %vm331_vm0, %v330_v0  ;;  %v323_v4 = vld [vmem:[%s418_s3 + $0x8] sm:$0xff]   ;;  %v324_v5 = vld [vmem:[%s418_s3 + $0x10] sm:$0xff]   ;;  %vm256_vm3 = vcmask 31744  }
   0x2   :  { %v27_v2 = vld [vmem:[%s417_s0] sm:$0xf]  ;;  %295 = vmatprep.subr.bf16.mxu1 %v330_v0  ;;  %303 = vmatprep.mubr.msk.bf16.mxu1 %vm331_vm0, %v330_v0  ;;  %v325_v6 = vld [vmem:[%s418_s3 + $0x18] sm:$0xff]   ;;  %v327_v8 = vld [vmem:[%s419_s5 + $0x8] sm:$0xff]  }
   0x3   :  { %290 = vmatpush3.bf16.msra.mxu0 %v321_v1  ;;  %v322_v3 = vld [vmem:[%s418_s3] sm:$0xff]   ;;  %v328_v17 = vld [vmem:[%s419_s5 + $0x10] sm:$0xff]   ;;  %v329_v18 = vld [vmem:[%s419_s5 + $0x18] sm:$0xff]  }
   0x4   :  { %307 = vmatprep.subr.bf16.mxu0 %v330_v0  ;;  %296 = vmatpush3.bf16.msra.mxu1 %v322_v3  ;;  %v326_v7 = vld [vmem:[%s419_s5] sm:$0xff]  }
   0x5   :  { %297 = vmatprep.subr.bf16.mxu1 %v330_v0  ;;  %v262_v9 = vld [vmem:[%s420_s2] ss:$0 sm:$0xff] }
   0x6   :  { %292 = vmatmul.mubr.msk.bf16.vlgmr.msra.gmra.mrb[0].mxu0 %vm43_vm1, %v27_v2  ;;  %v265_v19 = vld [vmem:[%s421_s4] ss:$0 sm:$0xff] }
   0x7   :  { %315 = vmatprep.mubr.msk.bf16.mxu0 %vm331_vm0, %v330_v0  ;;  %308 = vmatpush3.bf16.msra.mxu0 %v326_v7  ;;  %v271_v27 = vld [vmem:[%s422_s6] ss:$0 sm:$0xff] }
   0x8   :  { %298 = vmatpush3.bf16.msra.mxu1 %v323_v4  ;;  %309 = vmatprep.subr.bf16.mxu0 %v330_v0 }
   0x9   :  { %299 = vmatprep.subr.bf16.mxu1 %v330_v0 }
   0xb   :  { %310 = vmatpush3.bf16.msra.mxu0 %v327_v8 }
   0xc   :  { %300 = vmatpush3.bf16.msra.mxu1 %v324_v5  ;;  %311 = vmatprep.subr.bf16.mxu0 %v330_v0 }
   0xd   :  { %301 = vmatprep.subr.bf16.mxu1 %v330_v0 }
   0xf   :  { %312 = vmatpush3.bf16.msra.mxu0 %v328_v17 }
  0x10   :  { %302 = vmatpush3.bf16.msra.mxu1 %v325_v6  ;;  %313 = vmatprep.subr.bf16.mxu0 %v330_v0 }
  0x13   :  { %314 = vmatpush3.bf16.msra.mxu0 %v329_v18 }
  0xd9   :  { %v81_v10 = vpop.f32.mrb[0].mxu0 }
  0xda   :  { %v82_v11 = vadd.f32 %v262_v9, %v81_v10  ;;  %v293_v12 = vpop.f32.mrb[1].mxu0 }
  0xdb   :  { %v84_v13 = vpop.f32.mrb[2].mxu0 }
  0xdc   :  { %v87_v14 = vmax.f32 %v82_v11, 0.0  ;;  %v294_v15 = vpop.f32.mrb[3].mxu0 }
  0xde   :  { %v88_v16 = vpack.c.bf16 %v87_v14, %v87_v14 }
  0xe0   :  { %304 = vmatmul.mubr.msk.bf16.vlgmr.msra.gmra.mrb[0].mxu1 %vm128_vm2, %v88_v16 }
 0x1b3   :  { %v166_v20 = vpop.f32.mrb[0].mxu1 }
 0x1b4   :  { %v167_v21 = vadd.f32 %v265_v19, %v166_v20  ;;  %v305_v22 = vpop.f32.mrb[1].mxu1 }
 0x1b5   :  { %v169_v23 = vpop.f32.mrb[2].mxu1 }
 0x1b6   :  { %v172_v24 = vmax.f32 %v167_v21, 0.0  ;;  %v306_v25 = vpop.f32.mrb[3].mxu1 }
 0x1b8   :  { %v173_v26 = vpack.c.bf16 %v172_v24, %v172_v24 }
 0x1ba   :  { %316 = vmatmul.mubr.msk.bf16.vlgmr.msra.gmra.mrb[4].mxu0 %vm128_vm2, %v173_v26 }
 0x28d   :  { %v250_v28 = vpop.f32.mrb[4].mxu0 }
 0x28e   :  { %v251_v29 = vadd.f32 %v271_v27, %v250_v28  ;;  %v317_v30 = vpop.f32.mrb[5].mxu0 }
 0x28f   :  { %v253_v31 = vpop.f32.mrb[6].mxu0 }
 0x290   :  { %257 = vst.msk [vmem:[%s423_s7] sm:$0xff] %vm256_vm3, %v251_v29  ;;  %v318_v32 = vpop.f32.mrb[7].mxu0 }

</bundles_post_ra>
